<compile_context>
chip_gen: v7x
topology: tpu7x:2x2x1
jax: 0.10.0
libtpu: 0.0.40
codegen_flags: <defaults>
</compile_context>

<pallas_src>
import jax
import jax.numpy as jnp
from jax.experimental import pallas as pl
from jax.experimental.pallas import tpu as pltpu


def _upblock_kernel(x_ref, w_ref, b_ref, o_ref):
    # x_ref : (1, H, W, C_in)            f32
    # w_ref : (4*C_in, 4*C_out)          bf16  (fused sub-pixel weight matrix)
    # b_ref : (1, 4*C_out)               f32   (bias tiled 4x)
    # o_ref : (1, H, 2, W, 2*C_out)      f32
    _, H, W, C_in = x_ref.shape
    two_cout = o_ref.shape[4]
    c_out = two_cout // 2

    x = x_ref[0].astype(jnp.bfloat16)                      # (H, W, Cin)
    zc = jnp.zeros((H, 1, C_in), jnp.bfloat16)
    zr = jnp.zeros((1, W, C_in), jnp.bfloat16)
    x_r = jnp.concatenate([x[:, 1:, :], zc], axis=1)       # x[m, n+1]
    x_d = jnp.concatenate([x[1:, :, :], zr], axis=0)       # x[m+1, n]
    x_dr = jnp.concatenate([x_d[:, 1:, :], zc], axis=1)    # x[m+1, n+1]

    xcat = jnp.concatenate([x, x_r, x_d, x_dr], axis=-1)   # (H, W, 4*Cin)
    xcat = xcat.reshape(H * W, 4 * C_in)

    # One fused MXU matmul: columns are [y_even_even | y_even_odd | y_odd_even | y_odd_odd]
    y = jnp.dot(xcat, w_ref[...], preferred_element_type=jnp.float32)  # (H*W, 4*Cout)
    y = y + b_ref[...]                                                  # bias in f32
    y = y.reshape(H, W, 4 * c_out)

    # Even output rows get columns [0, 2*Cout); odd output rows get [2*Cout, 4*Cout).
    o_ref[0, :, 0, :, :] = y[..., : 2 * c_out].astype(o_ref.dtype)
    o_ref[0, :, 1, :, :] = y[..., 2 * c_out:].astype(o_ref.dtype)


def up_block(x_nchw, weight, bias):
    """ConvTranspose2d(C_in, C_out, 3, stride=2, padding=1, output_padding=1).

    x_nchw : (N, C_in, H, W) float32
    weight : (C_in, C_out, 3, 3) float32   (PyTorch ConvTranspose2d layout)
    bias   : (C_out,) float32
    returns (N, C_out, 2H, 2W) float32
    """
    N, C_in, H, W = x_nchw.shape
    C_out = weight.shape[1]

    x = jnp.transpose(x_nchw, (0, 2, 3, 1))                # NCHW -> NHWC

    # Build the fused (4*C_in, 4*C_out) sub-pixel weight matrix.
    # Taps (rows):    t0=x[m,n], t1=x[m,n+1], t2=x[m+1,n], t3=x[m+1,n+1]
    # Parities (cols): p0=(even,even), p1=(even,odd), p2=(odd,even), p3=(odd,odd)
    def Wk(kh, kw):
        return weight[:, :, kh, kw]                        # (C_in, C_out)

    Z = jnp.zeros((C_in, C_out), weight.dtype)
    row0 = jnp.concatenate([Wk(1, 1), Wk(1, 2), Wk(2, 1), Wk(2, 2)], axis=1)
    row1 = jnp.concatenate([Z,        Wk(1, 0), Z,        Wk(2, 0)], axis=1)
    row2 = jnp.concatenate([Z,        Z,        Wk(0, 1), Wk(0, 2)], axis=1)
    row3 = jnp.concatenate([Z,        Z,        Z,        Wk(0, 0)], axis=1)
    w_big = jnp.concatenate([row0, row1, row2, row3], axis=0).astype(jnp.bfloat16)
    b_big = jnp.tile(bias.astype(jnp.float32), 4).reshape(1, 4 * C_out)

    out = pl.pallas_call(
        _upblock_kernel,
        out_shape=jax.ShapeDtypeStruct((N, H, 2, W, 2 * C_out), jnp.float32),
        grid_spec=pltpu.PrefetchScalarGridSpec(
            num_scalar_prefetch=0,
            grid=(N,),
            in_specs=[
                pl.BlockSpec((1, H, W, C_in), lambda n: (n, 0, 0, 0)),
                pl.BlockSpec((4 * C_in, 4 * C_out), lambda n: (0, 0)),
                pl.BlockSpec((1, 4 * C_out), lambda n: (0, 0)),
            ],
            out_specs=pl.BlockSpec((1, H, 2, W, 2 * C_out),
                                   lambda n: (n, 0, 0, 0, 0)),
        ),
        compiler_params=pltpu.CompilerParams(
            dimension_semantics=("parallel",)),
    )(x, w_big, b_big)

    out = out.reshape(N, 2 * H, 2 * W, C_out)              # free interleave reshape
    return jnp.transpose(out, (0, 3, 1, 2))                # NHWC -> NCHW


def reference(x_nchw, weight, bias):
    """Pure-JAX reference for PyTorch ConvTranspose2d(3, stride=2, pad=1, out_pad=1)."""
    x = jnp.transpose(x_nchw, (0, 2, 3, 1)).astype(jnp.float32)       # NHWC
    # rhs[kh, kw, ci, co] = weight[ci, co, 2-kh, 2-kw]  (spatially flipped)
    w_hwio = jnp.transpose(weight, (2, 3, 0, 1))[::-1, ::-1, :, :]
    y = jax.lax.conv_general_dilated(
        x, w_hwio,
        window_strides=(1, 1),
        padding=[(1, 2), (1, 2)],            # k-1-pad = 1 ; + output_padding = 2
        lhs_dilation=(2, 2),
        dimension_numbers=('NHWC', 'HWIO', 'NHWC'))
    y = y + bias.reshape(1, 1, 1, -1)
    return jnp.transpose(y, (0, 3, 1, 2))


if __name__ == "__main__":
    key = jax.random.PRNGKey(0)
    in_channels, out_channels = 32, 64
    N, H, W = 2, 16, 16

    kx, kw, kb = jax.random.split(key, 3)
    x = jax.random.normal(kx, (N, in_channels, H, W), jnp.float32)         # NCHW
    weight = 0.1 * jax.random.normal(kw, (in_channels, out_channels, 3, 3),
                                     jnp.float32)                          # PyTorch layout
    bias = 0.1 * jax.random.normal(kb, (out_channels,), jnp.float32)

    out = up_block(x, weight, bias)
    out = jax.block_until_ready(out)
    assert out.shape == (N, out_channels, 2 * H, 2 * W), out.shape

    ref = reference(x, weight, bias)
    if not jnp.allclose(out, ref, atol=5e-2, rtol=5e-2):
        raise AssertionError(
            f"kernel vs reference mismatch, max abs diff = {jnp.max(jnp.abs(out - ref))}")

    print("KERNEL_OK")
</pallas_src>

<mosaic_0001>
module attributes {stable_mosaic.version = 11 : i64} {
  func.func @_upblock_kernel(%arg0: i32, %arg1: memref<1x16x16x32xf32, #tpu.memory_space<vmem>>, %arg2: memref<128x256xbf16, #tpu.memory_space<vmem>>, %arg3: memref<1x256xf32, #tpu.memory_space<vmem>>, %arg4: memref<1x16x2x16x128xf32, #tpu.memory_space<vmem>>) attributes {dimension_semantics = [#tpu.dimension_semantics<parallel>], iteration_bounds = array<i64: 2>, scalar_prefetch = 0 : i64, scratch_operands = 0 : i64, tpu.core_type = #tpu.core_type<tc>, window_params = [{transform_indices = @transform_0, window_bounds = array<i64: 1, 16, 16, 32>}, {pipeline_mode = #tpu.pipeline_mode<synchronous>, transform_indices = @transform_1, window_bounds = array<i64: 128, 256>}, {pipeline_mode = #tpu.pipeline_mode<synchronous>, transform_indices = @transform_2, window_bounds = array<i64: 1, 256>}, {transform_indices = @transform_3, window_bounds = array<i64: 1, 16, 2, 16, 128>}]} {
    %c0 = arith.constant 0 : index
    %c0_0 = arith.constant 0 : index
    %c0_1 = arith.constant 0 : index
    %c0_2 = arith.constant 0 : index
    %0 = vector.load %arg1[%c0, %c0_0, %c0_1, %c0_2] : memref<1x16x16x32xf32, #tpu.memory_space<vmem>>, vector<1x16x16x32xf32>
    %1 = vector.shape_cast %0 : vector<1x16x16x32xf32> to vector<16x16x32xf32>
    %2 = arith.truncf %1 : vector<16x16x32xf32> to vector<16x16x32xbf16>
    %cst = arith.constant 0.000000e+00 : bf16
    %3 = vector.broadcast %cst : bf16 to vector<16x1x32xbf16>
    %cst_3 = arith.constant 0.000000e+00 : bf16
    %4 = vector.broadcast %cst_3 : bf16 to vector<1x16x32xbf16>
    %5 = vector.extract_strided_slice %2 {offsets = [0, 1, 0], sizes = [16, 15, 32], strides = [1, 1, 1]} : vector<16x16x32xbf16> to vector<16x15x32xbf16>
    %6 = tpu.concatenate %5, %3 in 1 : vector<16x15x32xbf16>, vector<16x1x32xbf16> -> vector<16x16x32xbf16>
    %7 = vector.extract_strided_slice %2 {offsets = [1, 0, 0], sizes = [15, 16, 32], strides = [1, 1, 1]} : vector<16x16x32xbf16> to vector<15x16x32xbf16>
    %8 = tpu.concatenate %7, %4 in 0 : vector<15x16x32xbf16>, vector<1x16x32xbf16> -> vector<16x16x32xbf16>
    %9 = vector.extract_strided_slice %8 {offsets = [0, 1, 0], sizes = [16, 15, 32], strides = [1, 1, 1]} : vector<16x16x32xbf16> to vector<16x15x32xbf16>
    %10 = tpu.concatenate %9, %3 in 1 : vector<16x15x32xbf16>, vector<16x1x32xbf16> -> vector<16x16x32xbf16>
    %11 = tpu.concatenate %2, %6, %8, %10 in 2 : vector<16x16x32xbf16>, vector<16x16x32xbf16>, vector<16x16x32xbf16>, vector<16x16x32xbf16> -> vector<16x16x128xbf16>
    %12 = vector.shape_cast %11 : vector<16x16x128xbf16> to vector<256x128xbf16>
    %c0_4 = arith.constant 0 : index
    %c0_5 = arith.constant 0 : index
    %13 = vector.load %arg2[%c0_4, %c0_5] : memref<128x256xbf16, #tpu.memory_space<vmem>>, vector<128x256xbf16>
    %cst_6 = arith.constant dense<0.000000e+00> : vector<256x256xf32>
    %14 = tpu.matmul %12, %13, %cst_6 {dimension_numbers = #tpu.dot_dimension_numbers<[1], [0], [0], [1], [0, 0, 1, 1], [], []>} : vector<256x128xbf16>, vector<128x256xbf16>, vector<256x256xf32> -> vector<256x256xf32>
    %c0_7 = arith.constant 0 : index
    %c0_8 = arith.constant 0 : index
    %15 = vector.load %arg3[%c0_7, %c0_8] : memref<1x256xf32, #tpu.memory_space<vmem>>, vector<1x256xf32>
    %16 = vector.broadcast %15 : vector<1x256xf32> to vector<256x256xf32>
    %17 = arith.addf %14, %16 : vector<256x256xf32>
    %18 = vector.shape_cast %17 : vector<256x256xf32> to vector<16x16x256xf32>
    %19 = vector.extract_strided_slice %18 {offsets = [0, 0, 0], sizes = [16, 16, 128], strides = [1, 1, 1]} : vector<16x16x256xf32> to vector<16x16x128xf32>
    %c0_9 = arith.constant 0 : index
    %c0_10 = arith.constant 0 : index
    %c0_11 = arith.constant 0 : index
    %c0_12 = arith.constant 0 : index
    %c0_13 = arith.constant 0 : index
    %20 = vector.load %arg4[%c0_9, %c0_10, %c0_11, %c0_12, %c0_13] : memref<1x16x2x16x128xf32, #tpu.memory_space<vmem>>, vector<1x16x1x16x128xf32>
    %21 = vector.shape_cast %20 : vector<1x16x1x16x128xf32> to vector<16x16x128xf32>
    %22 = vector.shape_cast %19 : vector<16x16x128xf32> to vector<1x16x1x16x128xf32>
    tpu.vector_store %arg4[%c0_9, %c0_10, %c0_11, %c0_12, %c0_13], %22 {strides = array<i32>} : memref<1x16x2x16x128xf32, #tpu.memory_space<vmem>>, vector<1x16x1x16x128xf32>,
    %23 = vector.extract_strided_slice %18 {offsets = [0, 0, 128], sizes = [16, 16, 128], strides = [1, 1, 1]} : vector<16x16x256xf32> to vector<16x16x128xf32>
    %c0_14 = arith.constant 0 : index
    %c0_15 = arith.constant 0 : index
    %c1 = arith.constant 1 : index
    %c0_16 = arith.constant 0 : index
    %c0_17 = arith.constant 0 : index
    %24 = vector.load %arg4[%c0_14, %c0_15, %c1, %c0_16, %c0_17] : memref<1x16x2x16x128xf32, #tpu.memory_space<vmem>>, vector<1x16x1x16x128xf32>
    %25 = vector.shape_cast %24 : vector<1x16x1x16x128xf32> to vector<16x16x128xf32>
    %26 = vector.shape_cast %23 : vector<16x16x128xf32> to vector<1x16x1x16x128xf32>
    tpu.vector_store %arg4[%c0_14, %c0_15, %c1, %c0_16, %c0_17], %26 {strides = array<i32>} : memref<1x16x2x16x128xf32, #tpu.memory_space<vmem>>, vector<1x16x1x16x128xf32>,
    return
  }
  func.func @transform_0(%arg0: i32) -> (i32, i32, i32, i32) {
    %c0_i32 = arith.constant 0 : i32
    %c0_i32_0 = arith.constant 0 : i32
    %c0_i32_1 = arith.constant 0 : i32
    %c0_i32_2 = arith.constant 0 : i32
    return %arg0, %c0_i32, %c0_i32_0, %c0_i32_1 : i32, i32, i32, i32
  }
  func.func @transform_1(%arg0: i32) -> (i32, i32) {
    %c0_i32 = arith.constant 0 : i32
    %c0_i32_0 = arith.constant 0 : i32
    %c0_i32_1 = arith.constant 0 : i32
    return %c0_i32, %c0_i32_0 : i32, i32
  }
  func.func @transform_2(%arg0: i32) -> (i32, i32) {
    %c0_i32 = arith.constant 0 : i32
    %c0_i32_0 = arith.constant 0 : i32
    %c0_i32_1 = arith.constant 0 : i32
    return %c0_i32, %c0_i32_0 : i32, i32
  }
  func.func @transform_3(%arg0: i32) -> (i32, i32, i32, i32, i32) {
    %c0_i32 = arith.constant 0 : i32
    %c0_i32_0 = arith.constant 0 : i32
    %c0_i32_1 = arith.constant 0 : i32
    %c0_i32_2 = arith.constant 0 : i32
    %c0_i32_3 = arith.constant 0 : i32
    return %arg0, %c0_i32, %c0_i32_0, %c0_i32_1, %c0_i32_2 : i32, i32, i32, i32, i32
  }
}

</mosaic_0001>

<bundles_post_ra>
// kernel: tpu_custom_call.1
= control target key start
LH: loop header
LB: loop body
LE: loop exit
PB: predicated region body
PF: predicated region fallthrough
CT: control target
= control target key end

     0   :  { %8 = vsyncpa [#allocation3], 0  ;;  %s2079_s0 = inlined_call_operand.hbm [shape: f32[2,16,16,32], index: 0, kind: input, shape index: {}]   ;;  %s2080_s1 = inlined_call_operand.hbm [shape: bf16[128,256], index: 1, kind: input, shape index: {}]   ;;  %s2081_s2 = inlined_call_operand.vmem [shape: f32[1,256], index: 2, kind: input, shape index: {}]   ;;  %s2082_s3 = inlined_call_operand.hbm [shape: f32[2,16,2,16,128], index: 3, kind: output, shape index: {}]  }
   0x1   :  { %10 = vsyncpa [#allocation3 + $0x1], 0 }
   0x2   :  { %11 = vsyncpa [#allocation6], 0 }
   0x3   :  { %12 = vsyncpa [#allocation4], 0 }
   0x4   :  { %14 = vsyncpa [#allocation4 + $0x1], 0  ;;  %s1448_s12 = smov 0   ;;  %s1450_s13 = smov 0  }
   0x5   :  { %s1452_s14 = smov 0   ;;  %s1454_s15 = smov 0  }
   0x6 LB: > { %s1469_s16 = sadd.s32 4294967295, %s1415_s15   ;;  %s1116_s17 = sadd.s32 4294967294, %s1415_s15   ;;  %s1415_s15 = sphi %s1454_s15, %s2104_s15   ;;  %s1411_s14 = sphi %s1452_s14, %s2103_s14   ;;  %s1407_s13 = sphi %s1450_s13, %s2102_s13   ;;  %s1403_s12 = sphi %s1448_s12, %s2101_s12  }
   0x7   : > { %p40_p0 = scmp.ne.s32.totalorder %s1407_s13, %s1403_s12  ;;  %p2083_p1 = scmp.eq.s32.totalorder %s1469_s16, 0 }
   0x8   : > { %p112_p3 = scmp.eq.s32.totalorder %s1116_s17, 1  ;;  %p1117_p5 = scmp.ge.s32.totalorder %s1415_s15, 1 }
   0x9   : > { %p1478_p4 = por %p2083_p1, %p40_p0  ;;  %p119_p7 = scmp.lt.s32.totalorder %s1415_s15, 3 }
   0xa   : > { %p1483_p6 = por %p112_p3, %p40_p0  ;;  %s1417_s21 = smov [#allocation5]  }
   0xb   : > { %s2086_s18 = scalar_select %p1478_p4, 1, 0 }
   0xc   : > { %s2087_s19 = scalar_select %p1483_p6, 1, 0 }
   0xd   : > { %p1488_p8 = pnand %p1117_p5, %p119_p7  ;;  %s131_s22 = sshll.u32 %s1417_s21, 4  ;;  %s1492_s22 = int_to_ptr.vmem [resolvable:$true] %s131_s22 }
   0xe   : > { %s1504_s24 = sadd.s32 1, %s1415_s15   ;;  %s27_s25 = sadd.s32 1, %s1411_s14 }
   0xf   : > { %s2088_s20 = scalar_select %p1488_p8, 1, 0 }
  0x10   : > { %p1206_p9 = pneg %p1488_p8  ;;  %s24_s26 = ssub.s32 %s1415_s15, %s1504_s24 }
  0x11   : > { %s1287_s29 = scalar_lea.hbm %s2080_s1, 2048 }
  0x12   : > { %p1499_p11 = pnand %p1206_p9, %p2083_p1  ;;  %p1288_p12 = scmp.ne.s32.totalorder %s2080_s1, %s1287_s29 }
  0x13   : > { %p1294_p5 = scmp.lt.u32.totalorder %s1287_s29, %s2080_s1 }
  0x14   : > { %p1289_p13 = pneg %p1499_p11 }
  0x16   : > { %p1290_p0 = pnand %p1289_p13, %p1288_p12 }
  0x18   : > { %p1291_p3 = pneg %p1290_p0 }
  0x1a   : > { %p1296_p7 = pnand %p1294_p5, %p1291_p3 }
  0x1c   : > { %1299 = shalt.err (!%p1296_p7)
}
  0x1d   : > { %s1300_s7 = scalar_lea.vmem %s1492_s22, 2048  ;;  %p1308_p2 = scmp.lt.s32.totalorder %s1492_s22, %s1492_s22 }
  0x1e   : > { %p1301_p9 = scmp.ne.s32.totalorder %s1492_s22, %s1300_s7  ;;  %p1309_p6 = scmp.lt.s32.totalorder %s1300_s7, %s1300_s7 }
  0x20   : > { %p1303_p10 = pnand %p1301_p9, %p1289_p13  ;;  %p1310_p4 = por %p1309_p6, %p1308_p2 }
  0x22   : > { %p1304_p1 = pneg %p1303_p10 }
  0x24   : > { %p1311_p8 = pnand %p1310_p4, %p1304_p1 }
  0x26   : > { %1314 = shalt.err (!%p1311_p8)
}
  0x27   : > { %s1418_s8 = smov 128   ;;  %s1419_s9 = smov 8  }
  0x28   : > { %1209 = dma.hbm_to_vmem [thread:$0]  (!%p1499_p11), %s2080_s1, 2048, %s1492_s22, [#allocation6], %s1418_s8, %s1418_s8, %s1419_s9  }
  0x29   : > { %p25_p1 = scmp.eq.s32.totalorder %s24_s26, 0  ;;  %p34_p2 = scmp.ne.s32.totalorder %s1411_s14, %s1407_s13 }
  0x2a   : > { %p35_p4 = scmp.eq.s32.totalorder %s1415_s15, 0  ;;  %p1219_p6 = scmp.lt.s32.totalorder %s1415_s15, 2 }
  0x2b   : > { %s1538_s17 = scalar_select %p25_p1, %s1411_s14, %s27_s25  }
  0x2c   : > { %p36_p8 = por %p35_p4, %p34_p2  ;;  %p2090_p10 = scmp.eq.s32.totalorder %s1469_s16, 1 }
  0x2d   : > { %s148_s23 = sand.u32 1, %s1411_s14   ;;  %s1180_s27 = sshll.u32 %s1415_s15, 12 }
  0x2e   : > { %p1542_p12 = por %p2090_p10, %p34_p2  ;;  %s1120_s28 = sshll.u32 %s148_s23, 8 }
  0x2f   : > { %s1551_s4 = scalar_lea.hbm %s2079_s0, %s1180_s27  ;;  %s152_s22 = scalar_lea.vmem [#allocation2], %s1120_s28 }
  0x30   : > { %s159_s25 = sshll.u32 %s152_s22, 4  ;;  %p1553_p11 = pnand %p1219_p6, %p36_p8  ;;  %s1557_s25 = int_to_ptr.vmem [resolvable:$true] %s159_s25 }
  0x31   : > { %s1559_s5 = scalar_lea.sflag [#allocation3], %s148_s23  ;;  %s1315_s6 = scalar_lea.hbm %s1551_s4, 4096 }
  0x32   : > { %p1316_p13 = scmp.ne.s32.totalorder %s1551_s4, %s1315_s6  ;;  %p1317_p0 = pneg %p1553_p11 }
  0x33   : > { %s1320_s11 = scalar_lea.hbm %s2079_s0, 8192  ;;  %p1321_p7 = scmp.lt.u32.totalorder %s1551_s4, %s2079_s0 }
  0x34   : > { %p1318_p3 = pnand %p1317_p0, %p1316_p13  ;;  %p1322_p9 = scmp.lt.u32.totalorder %s1320_s11, %s1315_s6 }
  0x35   : > { %p1324_p2 = scmp.lt.u32.totalorder %s1315_s6, %s1551_s4 }
  0x36   : > { %p1319_p5 = pneg %p1318_p3  ;;  %p1323_p1 = por %p1322_p9, %p1321_p7 }
  0x38   : > { %p1325_p4 = por %p1324_p2, %p1323_p1 }
  0x3a   : > { %p1326_p6 = pnand %p1325_p4, %p1319_p5 }
  0x3c   : > { %1329 = shalt.err (!%p1326_p6)
}
  0x3d   : > { %s1330_s23 = scalar_lea.vmem %s1557_s25, 4096  ;;  %s1420_s29 = smov [#allocation2]  }
  0x3e   : > { %p1331_p8 = scmp.ne.s32.totalorder %s1557_s25, %s1330_s23  ;;  %s1335_s30 = sshll.u32 %s1420_s29, 4  ;;  %s1336_s30 = int_to_ptr.vmem [resolvable:$false] %s1335_s30 }
  0x3f   : > { %s1337_s22 = scalar_lea.vmem %s1336_s30, 8192  ;;  %p1338_p3 = scmp.lt.s32.totalorder %s1557_s25, %s1336_s30 }
  0x40   : > { %p1333_p10 = pnand %p1331_p8, %p1317_p0  ;;  %p1339_p7 = scmp.lt.s32.totalorder %s1337_s22, %s1330_s23 }
  0x42   : > { %p1334_p13 = pneg %p1333_p10  ;;  %p1340_p9 = por %p1339_p7, %p1338_p3 }
  0x44   : > { %p1341_p1 = pnand %p1340_p9, %p1334_p13 }
  0x46   : > { %1344 = shalt.err (!%p1341_p1)
}
  0x47   : > { %1213 = dma.hbm_to_vmem [thread:$0]  (!%p1553_p11), %s1551_s4, 4096, %s1557_s25, %s1559_s5, %s1418_s8, %s1418_s8, %s1419_s9  }
  0x48   : > { %p2093_p0 = scmp.ne.s32.totalorder %s2088_s20, 0 }
  0x49   : > { %s1593_s6 = sand.u32 (!%p2093_p0), 1, %s1407_s13   ;;  %p2094_p5 = scmp.ne.s32.totalorder (!%p2093_p0), %s2086_s18, 0 }
  0x4a   : > { %171 = sbr.rel (%p2093_p0) target bundleno = 534 (0x216), region = 32  ;;  %s1124_s7 = sshll.u32 (!%p2093_p0), %s1593_s6, 8 }
  0x4b   : > { %s174_s10 = scalar_lea.sflag (!%p2093_p0), [#allocation3], %s1593_s6  ;;  %s1597_s11 = scalar_lea.vmem (!%p2093_p0), [#allocation2], %s1124_s7 }
  0x51   : > { %1390 = dma.done.wait (%p2094_p5), %s174_s10, 4096  }
  0x52   : > { %1392 = vsyncadd (%p2094_p5), %s174_s10, 4294963200  ;;  %p2095_p11 = scmp.eq.s32.totalorder %s1469_s16, 0 }
  0x54   : > { %1394 = dma.done.wait (%p2095_p11), [#allocation6], 2048   ;;  %p2096_p2 = pmov %p2095_p11 }
  0x55   : > { %v1421_v0 = vmov 0   ;;  %v207_v1 = vld [vmem:[%s1597_s11 + $0x10] sm:$0xff]  ;;  %v208_v2 = vld [vmem:[%s1597_s11 + $0x18] sm:$0xff]  ;;  %v209_v3 = vld [vmem:[%s1597_s11 + $0x20] sm:$0xff]  ;;  %s1422_s18 = smov 64   ;;  %vm381_vm0 = vcmask 1047552  }
  0x56   : > { %1396 = vsyncadd (%p2096_p2), [#allocation6], 4294965248  ;;  %873 = vmatprep.mubr.bf16.mxu1 %v1421_v0  ;;  %793 = vmatprep.mubr.bf16.mxu0 %v1421_v0  ;;  %v1612_v4 = vpack.c.bf16 %v208_v2, %v207_v1  ;;  %v210_v5 = vld [vmem:[%s1597_s11 + $0x28] sm:$0xff]  ;;  %v223_v6 = vld [vmem:[%s1597_s11 + $0x90] sm:$0xff]  ;;  %vm382_vm1 = vsmask.f32 7424 }
  0x57   : > { %v224_v7 = vld [vmem:[%s1597_s11 + $0x98] sm:$0xff]  ;;  %v1617_v8 = vpack.c.bf16 %v210_v5, %v209_v3  ;;  %v205_v10 = vld [vmem:[%s1597_s11] sm:$0xff]  ;;  %v206_v11 = vld [vmem:[%s1597_s11 + $0x8] sm:$0xff]  ;;  %s1423_s20 = smov 32   ;;  %s1424_s8 = smov 96   ;;  %vm538_vm3 = vcmask 261120  }
  0x58   : > { %v1619_v9 = vpack.c.bf16 %v224_v7, %v223_v6  ;;  %v225_v12 = vld [vmem:[%s1597_s11 + $0xa0] sm:$0xff]  ;;  %473 = vrot.lane.b32.xlu1 %v1612_v4, %s1422_s18  ;;  %v1626_v13 = vpack.c.bf16 %v206_v11, %v205_v10  ;;  %v226_v14 = vld [vmem:[%s1597_s11 + $0xa8] sm:$0xff]  ;;  %v263_v22 = vshll.u32 %v1612_v4, 16  ;;  %vm1646_vm2 = vmand %vm381_vm0, %vm382_vm1  ;;  %v261_v33 = vshrl.u32 %v1612_v4, 16  ;;  %s1126_s25 = sshll.u32 %s1593_s6, 9  ;;  %s1181_s5 = sshll.u32 %s1469_s16, 13 }
  0x59   : > { %v221_v15 = vld [vmem:[%s1597_s11 + $0x80] sm:$0xff]  ;;  %v222_v16 = vld [vmem:[%s1597_s11 + $0x88] sm:$0xff]  ;;  %475 = vrot.lane.b32.xlu0 %v1617_v8, %s1422_s18  ;;  %v1640_v23 = vpack.c.bf16 %v226_v14, %v225_v12  ;;  %v227_v37 = vld [vmem:[%s1597_s11 + $0xb0] sm:$0xff]  ;;  %v270_v45 = vshll.u32 %v1617_v8, 16  ;;  %v268_v52 = vshrl.u32 %v1617_v8, 16  ;;  %vm604_vm4 = vcmask 785408   ;;  %s2029_s29 = scalar_lea.hbm %s2082_s3, %s1181_s5 }
  0x5a   : > { %v1633_v17 = vpack.c.bf16 %v222_v16, %v221_v15  ;;  %v317_v18 = vshrl.u32 %v1619_v9, 16  ;;  %v319_v19 = vshll.u32 %v1619_v9, 16  ;;  %v254_v20 = vshrl.u32 %v1626_v13, 16  ;;  %v228_v38 = vld [vmem:[%s1597_s11 + $0xb8] sm:$0xff]  ;;  %v1263_v42 = vld [vmem:[#allocation5 + $0x4] ss:$8 sps:$4 sm:$0xff]  }
  0x5b   : > { %v256_v21 = vshll.u32 %v1626_v13, 16  ;;  %v326_v31 = vshll.u32 %v1640_v23, 16  ;;  %v265_v34 = vrot.slane %v263_v22, 1  ;;  %v324_v40 = vshrl.u32 %v1640_v23, 16  ;;  %v1265_v46 = vld [vmem:[#allocation5] ss:$8 sps:$4 sm:$0xff]   ;;  %1182 = vmatprep.subr.bf16.mxu1 %v1263_v42  ;;  %761 = vmatprep.subr.bf16.mxu0 %v1263_v42 }
  0x5c   : > { %v310_v24 = vshrl.u32 %v1633_v17, 16  ;;  %v312_v25 = vshll.u32 %v1633_v17, 16  ;;  %v321_v26 = vrot.slane %v319_v19, 1  ;;  %489 = vrot.lane.b32.xlu1 %v1619_v9, %s1422_s18  ;;  %v1266_v47 = vld [vmem:[#allocation5 + $0x14] ss:$8 sps:$4 sm:$0xff]   ;;  %1190 = vmatpush1.bf16.msra.mxu1 %v1265_v46  ;;  %v1670_v50 = vpack.c.bf16 %v228_v38, %v227_v37  ;;  %v229_v6 = vld [vmem:[%s1597_s11 + $0xc0] sm:$0xff] }
  0x5d   : > { %v258_v27 = vrot.slane %v256_v21, 1  ;;  %v328_v41 = vrot.slane %v326_v31, 1  ;;  %v266_v44 = vor.u32 %v265_v34, %v261_v33  ;;  %v1268_v48 = vld [vmem:[#allocation5 + $0x10] ss:$8 sps:$4 sm:$0xff]   ;;  %762 = vmatpush1.bf16.msra.mxu0 %v1265_v46  ;;  %v272_v53 = vrot.slane %v270_v45, 1  ;;  %1183 = vmatprep.subr.bf16.mxu1 %v1266_v47  ;;  %v230_v7 = vld [vmem:[%s1597_s11 + $0xc8] sm:$0xff] }
  0x5e   : > { %v314_v29 = vrot.slane %v312_v25, 1  ;;  %v322_v30 = vor.u32 %v321_v26, %v317_v18  ;;  %763 = vmatprep.subr.bf16.mxu0 %v1266_v47  ;;  %v1269_v54 = vld [vmem:[#allocation5 + $0x24] ss:$8 sps:$4 sm:$0xff]   ;;  %v211_v55 = vld [vmem:[%s1597_s11 + $0x30] sm:$0xff]  ;;  %v212_v56 = vld [vmem:[%s1597_s11 + $0x38] sm:$0xff]  ;;  %v333_v59 = vshll.u32 %v1670_v50, 16  ;;  %v1694_v14 = vpack.c.bf16 %v230_v7, %v229_v6 }
  0x5f   : > { %v259_v32 = vor.u32 %v258_v27, %v254_v20  ;;  %v329_v49 = vor.u32 %v328_v41, %v324_v40  ;;  %v385_v51 = vsel %vm1646_vm2, %v266_v44, 0  ;;  %v1271_v57 = vld [vmem:[#allocation5 + $0x20] ss:$8 sps:$4 sm:$0xff]   ;;  %v273_v60 = vor.u32 %v272_v53, %v268_v52  ;;  %v1272_v62 = vld [vmem:[#allocation5 + $0x34] ss:$8 sps:$4 sm:$0xff]   ;;  %s1900_s26 = scalar_lea.vmem [#allocation7], %s1126_s25 }
  0x60   : > { %v315_v35 = vor.u32 %v314_v29, %v310_v24  ;;  %491 = vrot.lane.b32.xlu1 %v1640_v23, %s1422_s18  ;;  %v393_v39 = vsel %vm1646_vm2, %v322_v30, 0  ;;  %1191 = vmatpush1.bf16.msra.mxu1 %v1268_v48  ;;  %v1682_v61 = vpack.c.bf16 %v212_v56, %v211_v55  ;;  %v1274_v63 = vld [vmem:[#allocation5 + $0x30] ss:$8 sps:$4 sm:$0xff]   ;;  %v331_v1 = vshrl.u32 %v1670_v50, 16  ;;  %v1275_v10 = vld [vmem:[#allocation5 + $0x44] ss:$8 sps:$4 sm:$0xff]  }
  0x61   : > { %v384_v36 = vsel %vm1646_vm2, %v259_v32, 0  ;;  %v394_v58 = vsel %vm1646_vm2, %v329_v49, 0  ;;  %764 = vmatpush1.bf16.msra.mxu0 %v1268_v48  ;;  %1184 = vmatprep.subr.bf16.mxu1 %v1269_v54  ;;  %v335_v2 = vrot.slane %v333_v59, 1  ;;  %v386_v3 = vsel %vm1646_vm2, %v273_v60, 0  ;;  %v1277_v11 = vld [vmem:[#allocation5 + $0x40] ss:$8 sps:$4 sm:$0xff]  }
  0x62   : > { %425 = vrot.lane.b32.xlu0 %v384_v36, %s1423_s20  ;;  %v1664_v43 = vsel %vm1646_vm2, %v315_v35, 0  ;;  %765 = vmatprep.subr.bf16.mxu0 %v1269_v54  ;;  %v277_v5 = vshll.u32 %v1682_v61, 16  ;;  %v275_v15 = vshrl.u32 %v1682_v61, 16  ;;  %v1278_v18 = vld [vmem:[#allocation5 + $0x54] ss:$8 sps:$4 sm:$0xff]   ;;  %v213_v19 = vld [vmem:[%s1597_s11 + $0x40] sm:$0xff] }
  0x63   : > { %v336_v12 = vor.u32 %v335_v2, %v331_v1  ;;  %v214_v20 = vld [vmem:[%s1597_s11 + $0x48] sm:$0xff]  ;;  %v1280_v21 = vld [vmem:[#allocation5 + $0x50] ss:$8 sps:$4 sm:$0xff]   ;;  %v340_v24 = vshll.u32 %v1694_v14, 16  ;;  %v338_v30 = vshrl.u32 %v1694_v14, 16  ;;  %v233_v54 = vld [vmem:[%s1597_s11 + $0xe0] sm:$0xff] }
  0x64   : > { %522 = vrot.lane.b32.xlu1 %v393_v39, %s1424_s8  ;;  %1192 = vmatpush1.bf16.msra.mxu1 %v1271_v57  ;;  %v279_v16 = vrot.slane %v277_v5, 1  ;;  %v1705_v26 = vpack.c.bf16 %v214_v20, %v213_v19  ;;  %v1281_v27 = vld [vmem:[#allocation5 + $0x64] ss:$8 sps:$4 sm:$0xff]   ;;  %v1283_v29 = vld [vmem:[#allocation5 + $0x60] ss:$8 sps:$4 sm:$0xff]   ;;  %v231_v34 = vld [vmem:[%s1597_s11 + $0xd0] sm:$0xff] }
  0x65   : > { %766 = vmatpush1.bf16.msra.mxu0 %v1271_v57  ;;  %1185 = vmatprep.subr.bf16.mxu1 %v1272_v62  ;;  %v395_v22 = vsel %vm1646_vm2, %v336_v12, 0  ;;  %v342_v31 = vrot.slane %v340_v24, 1  ;;  %v232_v35 = vld [vmem:[%s1597_s11 + $0xd8] sm:$0xff]  ;;  %v215_v42 = vld [vmem:[%s1597_s11 + $0x50] sm:$0xff]  ;;  %v234_v55 = vld [vmem:[%s1597_s11 + $0xe8] sm:$0xff]  ;;  %vm571_vm5 = vcmask 523264  }
  0x66   : > { %441 = vrot.lane.b32.xlu0 %v1664_v43, %s1423_s20  ;;  %767 = vmatprep.subr.bf16.mxu0 %v1272_v62  ;;  %v280_v25 = vor.u32 %v279_v16, %v275_v15  ;;  %v284_v33 = vshll.u32 %v1705_v26, 16  ;;  %v1284_v36 = vld [vmem:[#allocation5 + $0x74] ss:$8 sps:$4 sm:$0xff]   ;;  %v1286_v37 = vld [vmem:[#allocation5 + $0x70] ss:$8 sps:$4 sm:$0xff]   ;;  %v282_v40 = vshrl.u32 %v1705_v26, 16  ;;  %v1742_v57 = vpack.c.bf16 %v234_v55, %v233_v54 }
  0x67   : > { %v343_v38 = vor.u32 %v342_v31, %v338_v30  ;;  %v216_v44 = vld [vmem:[%s1597_s11 + $0x58] sm:$0xff]  ;;  %v217_v60 = vld [vmem:[%s1597_s11 + $0x60] sm:$0xff]  ;;  %v218_v62 = vld [vmem:[%s1597_s11 + $0x68] sm:$0xff]  ;;  %s1033_s27 = sshll.u32 %s1900_s26, 4  ;;  %s1020_s16 = scalar_lea.sflag [#allocation4], %s1593_s6  ;;  %s2031_s27 = int_to_ptr.vmem [resolvable:$true] %s1033_s27 }
  0x68   : > { %443 = vrot.lane.b32.xlu1 %v393_v39, %s1423_s20  ;;  %1193 = vmatpush1.bf16.msra.mxu1 %v1274_v63  ;;  %v387_v32 = vsel %vm1646_vm2, %v280_v25, 0  ;;  %v1718_v39 = vpack.c.bf16 %v232_v35, %v231_v34  ;;  %v286_v41 = vrot.slane %v284_v33, 1  ;;  %v1729_v48 = vpack.c.bf16 %v216_v44, %v215_v42  ;;  %v236_v12 = vld [vmem:[%s1597_s11 + $0xf8] sm:$0xff]  ;;  %v219_v20 = vld [vmem:[%s1597_s11 + $0x70] sm:$0xff]  ;;  %s1345_s30 = scalar_lea.vmem %s2031_s27, 8192  ;;  %s1425_s22 = smov [#allocation7]  }
  0x69   : > { %768 = vmatpush1.bf16.msra.mxu0 %v1274_v63  ;;  %1186 = vmatprep.subr.bf16.mxu1 %v1275_v10  ;;  %v396_v45 = vsel %vm1646_vm2, %v343_v38, 0  ;;  %v354_v1 = vshll.u32 %v1742_v57, 16  ;;  %v352_v5 = vshrl.u32 %v1742_v57, 16  ;;  %p1346_p4 = scmp.ne.s32.totalorder %s2031_s27, %s1345_s30  ;;  %s1349_s7 = sshll.u32 %s1425_s22, 4  ;;  %s1350_s7 = int_to_ptr.vmem [resolvable:$false] %s1349_s7 }
  0x6a   : > { %506 = vrot.lane.b32.xlu0 %v385_v51, %s1424_s8  ;;  %769 = vmatprep.subr.bf16.mxu0 %v1275_v10  ;;  %v347_v46 = vshll.u32 %v1718_v39, 16  ;;  %v287_v47 = vor.u32 %v286_v41, %v282_v40  ;;  %v345_v49 = vshrl.u32 %v1718_v39, 16  ;;  %v291_v53 = vshll.u32 %v1729_v48, 16  ;;  %s1351_s10 = scalar_lea.vmem %s1350_s7, 16384  ;;  %p1352_p10 = scmp.lt.s32.totalorder %s2031_s27, %s1350_s7 }
  0x6b   : > { %v356_v6 = vrot.slane %v354_v1, 1  ;;  %v405_v40 = vrot.slane %v1421_v0, 1  ;;  %p1347_p6 = pnand %p1346_p4, %p1542_p12  ;;  %p1353_p13 = scmp.lt.s32.totalorder %s1351_s10, %s1345_s30 }
  0x6c   : > { %524 = vrot.lane.b32.xlu1 %v394_v58, %s1424_s8  ;;  %1194 = vmatpush1.bf16.msra.mxu1 %v1277_v11  ;;  %v388_v52 = vsel %vm1646_vm2, %v287_v47, 0  ;;  %v293_v59 = vrot.slane %v291_v53, 1 }
  0x6d   : > { %770 = vmatpush1.bf16.msra.mxu0 %v1277_v11  ;;  %1187 = vmatprep.subr.bf16.mxu1 %v1278_v18  ;;  %v235_v11 = vld [vmem:[%s1597_s11 + $0xf0] sm:$0xff]  ;;  %v357_v15 = vor.u32 %v356_v6, %v352_v5  ;;  %v408_v41 = vsel %vm1646_vm2, %v405_v40, 0  ;;  %p1348_p8 = pneg %p1347_p6  ;;  %p1354_p3 = por %p1353_p13, %p1352_p10 }
  0x6e   : > { %427 = vrot.lane.b32.xlu0 %v385_v51, %s1423_s20  ;;  %771 = vmatprep.subr.bf16.mxu0 %v1278_v18  ;;  %v349_v51 = vrot.slane %v347_v46, 1  ;;  %v1766_v16 = vpack.c.bf16 %v236_v12, %v235_v11 }
  0x6f   : > { %p1355_p7 = pnand %p1354_p3, %p1348_p8 }
  0x70   : > { %445 = vrot.lane.b32.xlu1 %v394_v58, %s1423_s20  ;;  %1195 = vmatpush1.bf16.msra.mxu1 %v1280_v21  ;;  %v350_v56 = vor.u32 %v349_v51, %v345_v49  ;;  %v289_v58 = vshrl.u32 %v1729_v48, 16  ;;  %v361_v24 = vshll.u32 %v1766_v16, 16 }
  0x71   : > { %772 = vmatpush1.bf16.msra.mxu0 %v1280_v21  ;;  %1188 = vmatprep.subr.bf16.mxu1 %v1281_v27  ;;  %v220_v21 = vld [vmem:[%s1597_s11 + $0x78] sm:$0xff] }
  0x72   : > { %508 = vrot.lane.b32.xlu0 %v386_v3, %s1424_s8  ;;  %773 = vmatprep.subr.bf16.mxu0 %v1281_v27  ;;  %v397_v63 = vsel %vm1646_vm2, %v350_v56, 0  ;;  %v294_v2 = vor.u32 %v293_v59, %v289_v58  ;;  %v1777_v27 = vpack.c.bf16 %v220_v21, %v219_v20  ;;  %v363_v30 = vrot.slane %v361_v24, 1 }
  0x74   : > { %493 = vrot.lane.b32.xlu1 %v1670_v50, %s1422_s18  ;;  %1196 = vmatpush1.bf16.msra.mxu1 %v1283_v29  ;;  %v389_v7 = vsel %vm1646_vm2, %v294_v2, 0  ;;  %v303_v34 = vshrl.u32 %v1777_v27, 16 }
  0x75   : > { %774 = vmatpush1.bf16.msra.mxu0 %v1283_v29  ;;  %1189 = vmatprep.subr.bf16.mxu1 %v1284_v36  ;;  %v359_v29 = vshrl.u32 %v1766_v16, 16 }
  0x76   : > { %429 = vrot.lane.b32.xlu0 %v386_v3, %s1423_s20  ;;  %775 = vmatprep.subr.bf16.mxu0 %v1284_v36  ;;  %v1753_v3 = vpack.c.bf16 %v218_v62, %v217_v60 }
  0x77   : > { %v364_v33 = vor.u32 %v363_v30, %v359_v29 }
  0x78   : > { %526 = vrot.lane.b32.xlu1 %v395_v22, %s1424_s8  ;;  %1197 = vmatpush1.bf16.msra.mxu1 %v1286_v37  ;;  %v298_v10 = vshll.u32 %v1753_v3, 16  ;;  %v296_v18 = vshrl.u32 %v1753_v3, 16 }
  0x79   : > { %776 = vmatpush1.bf16.msra.mxu0 %v1286_v37  ;;  %v399_v36 = vsel %vm1646_vm2, %v364_v33, 0 }
  0x7a   : > { %477 = vrot.lane.b32.xlu0 %v1682_v61, %s1422_s18  ;;  %v300_v19 = vrot.slane %v298_v10, 1 }
  0x7c   : > { %447 = vrot.lane.b32.xlu1 %v395_v22, %s1423_s20  ;;  %v398_v22 = vsel %vm1646_vm2, %v357_v15, 0  ;;  %v301_v25 = vor.u32 %v300_v19, %v296_v18 }
  0x7e   : > { %510 = vrot.lane.b32.xlu0 %v387_v32, %s1424_s8  ;;  %v390_v31 = vsel %vm1646_vm2, %v301_v25, 0 }
  0x80   : > { %495 = vrot.lane.b32.xlu1 %v1694_v14, %s1422_s18 }
  0x82   : > { %431 = vrot.lane.b32.xlu0 %v387_v32, %s1423_s20  ;;  %v305_v32 = vshll.u32 %v1777_v27, 16 }
  0x84   : > { %528 = vrot.lane.b32.xlu1 %v396_v45, %s1424_s8  ;;  %v307_v35 = vrot.slane %v305_v32, 1 }
  0x86   : > { %479 = vrot.lane.b32.xlu0 %v1705_v26, %s1422_s18  ;;  %v308_v37 = vor.u32 %v307_v35, %v303_v34 }
  0x88   : > { %449 = vrot.lane.b32.xlu1 %v396_v45, %s1423_s20  ;;  %v391_v38 = vsel %vm1646_vm2, %v308_v37, 0 }
  0x8a   : > { %512 = vrot.lane.b32.xlu0 %v388_v52, %s1424_s8 }
  0x8c   : > { %497 = vrot.lane.b32.xlu1 %v1718_v39, %s1422_s18 }
  0x8e   : > { %433 = vrot.lane.b32.xlu0 %v388_v52, %s1423_s20 }
  0x90   : > { %530 = vrot.lane.b32.xlu1 %v397_v63, %s1424_s8 }
  0x92   : > { %481 = vrot.lane.b32.xlu0 %v1729_v48, %s1422_s18 }
  0x94   : > { %451 = vrot.lane.b32.xlu1 %v397_v63, %s1423_s20 }
  0x96   : > { %514 = vrot.lane.b32.xlu0 %v389_v7, %s1424_s8 }
  0x98   : > { %499 = vrot.lane.b32.xlu1 %v1742_v57, %s1422_s18 }
  0x9a   : > { %435 = vrot.lane.b32.xlu0 %v389_v7, %s1423_s20 }
  0x9c   : > { %532 = vrot.lane.b32.xlu1 %v398_v22, %s1424_s8 }
  0x9e   : > { %483 = vrot.lane.b32.xlu0 %v1753_v3, %s1422_s18 }
  0xa0   : > { %453 = vrot.lane.b32.xlu1 %v398_v22, %s1423_s20 }
  0xa2   : > { %516 = vrot.lane.b32.xlu0 %v390_v31, %s1424_s8 }
  0xa4   : > { %501 = vrot.lane.b32.xlu1 %v1766_v16, %s1422_s18 }
  0xa6   : > { %437 = vrot.lane.b32.xlu0 %v390_v31, %s1423_s20 }
  0xa8   : > { %534 = vrot.lane.b32.xlu1 %v399_v36, %s1424_s8 }
  0xaa   : > { %485 = vrot.lane.b32.xlu0 %v1777_v27, %s1422_s18 }
  0xac   : > { %455 = vrot.lane.b32.xlu1 %v399_v36, %s1423_s20 }
  0xae   : > { %518 = vrot.lane.b32.xlu0 %v391_v38, %s1424_s8 }
  0xb0   : > { %503 = vrot.lane.b32.xlu1 %v1421_v0, %s1422_s18 }
  0xb2   : > { %439 = vrot.lane.b32.xlu0 %v391_v38, %s1423_s20 }
  0xb4   : > { %536 = vrot.lane.b32.xlu1 %v408_v41, %s1424_s8 }
  0xb6   : > { %487 = vrot.lane.b32.xlu0 %v1633_v17, %s1422_s18 }
  0xba   : > { %520 = vrot.lane.b32.xlu0 %v1664_v43, %s1424_s8 }
  0xca   : > { %v474_v42 = vpop.permute.xlu1 %473 }
  0xcb   : > { %v476_v44 = vpop.permute.xlu0 %475 }
  0xce   : > { %v490_v45 = vpop.permute.xlu1 %489 }
  0xd2   : > { %v492_v46 = vpop.permute.xlu1 %491 }
  0xd4   : > { %v426_v47 = vpop.permute.xlu0 %425 }
  0xd5   : > { %v540_v28 = vsel %vm538_vm3, %v1626_v13, %v426_v47 }
  0xd6   : > { %v523_v49 = vpop.permute.xlu1 %522  ;;  %v573_v56 = vsel %vm571_vm5, %v540_v28, %v474_v42 }
  0xd8   : > { %v442_v51 = vpop.permute.xlu0 %441 }
  0xd9   : > { %v556_v52 = vsel %vm538_vm3, %v1633_v17, %v442_v51 }
  0xda   : > { %v589_v53 = vsel %vm571_vm5, %v556_v52, %v490_v45  ;;  %v444_v54 = vpop.permute.xlu1 %443 }
  0xdb   : > { %v630_v43 = vsel %vm604_vm4, %v589_v53, %v523_v49  ;;  %v558_v58 = vsel %vm538_vm3, %v1619_v9, %v444_v54 }
  0xdc   : > { %874 = vmatmul.mubr.bf16.vlgmr.msra.gmra.mrb[0].mxu1 %v630_v43  ;;  %v507_v55 = vpop.permute.xlu0 %506  ;;  %v591_v60 = vsel %vm571_vm5, %v558_v58, %v492_v46 }
  0xdd   : > { %v606_v59 = vsel %vm604_vm4, %v573_v56, %v507_v55  ;;  %883 = vmatprep.mubr.bf16.mxu1 %v1421_v0 }
  0xde   : > { %794 = vmatmul.mubr.bf16.vlgmr.msra.gmra.mrb[0].mxu0 %v606_v59  ;;  %v525_v13 = vpop.permute.xlu1 %524 }
  0xdf   : > { %803 = vmatprep.mubr.bf16.mxu0 %v1421_v0  ;;  %v633_v63 = vsel %vm604_vm4, %v591_v60, %v525_v13 }
  0xe0   : > { %v428_v17 = vpop.permute.xlu0 %427 }
  0xe1   : > { %v542_v62 = vsel %vm538_vm3, %v1612_v4, %v428_v17 }
  0xe2   : > { %v446_v1 = vpop.permute.xlu1 %445  ;;  %v575_v9 = vsel %vm571_vm5, %v542_v62, %v476_v44 }
  0xe3   : > { %v560_v7 = vsel %vm538_vm3, %v1640_v23, %v446_v1 }
  0xe4   : > { %884 = vmatmul.mubr.bf16.gmra.mrb[4].mxu1 %v633_v63  ;;  %v509_v2 = vpop.permute.xlu0 %508 }
  0xe5   : > { %v609_v5 = vsel %vm604_vm4, %v575_v9, %v509_v2  ;;  %893 = vmatprep.mubr.bf16.mxu1 %v1421_v0 }
  0xe6   : > { %804 = vmatmul.mubr.bf16.gmra.mrb[4].mxu0 %v609_v5  ;;  %v494_v6 = vpop.permute.xlu1 %493 }
  0xe7   : > { %813 = vmatprep.mubr.bf16.mxu0 %v1421_v0  ;;  %v593_v4 = vsel %vm571_vm5, %v560_v7, %v494_v6 }
  0xe8   : > { %v430_v10 = vpop.permute.xlu0 %429 }
  0xe9   : > { %v544_v18 = vsel %vm538_vm3, %v1617_v8, %v430_v10 }
  0xea   : > { %v527_v11 = vpop.permute.xlu1 %526 }
  0xeb   : > { %v636_v15 = vsel %vm604_vm4, %v593_v4, %v527_v11 }
  0xec   : > { %v478_v12 = vpop.permute.xlu0 %477  ;;  %894 = vmatmul.mubr.bf16.gmra.mrb[8].mxu1 %v636_v15 }
  0xed   : > { %903 = vmatprep.mubr.bf16.mxu1 %v1421_v0  ;;  %v577_v20 = vsel %vm571_vm5, %v544_v18, %v478_v12 }
  0xee   : > { %v448_v19 = vpop.permute.xlu1 %447 }
  0xef   : > { %v562_v24 = vsel %vm538_vm3, %v1670_v50, %v448_v19 }
  0xf0   : > { %v511_v21 = vpop.permute.xlu0 %510 }
  0xf1   : > { %v612_v22 = vsel %vm604_vm4, %v577_v20, %v511_v21  ;;  %v671_v20 = vlaneseq }
  0xf2   : > { %814 = vmatmul.mubr.bf16.gmra.mrb[8].mxu0 %v612_v22  ;;  %v496_v23 = vpop.permute.xlu1 %495  ;;  %v669_v22 = vld [vmem:[%s2081_s2] sm:$0x3] }
  0xf3   : > { %823 = vmatprep.mubr.bf16.mxu0 %v1421_v0  ;;  %v595_v29 = vsel %vm571_vm5, %v562_v24, %v496_v23 }
  0xf4   : > { %v432_v25 = vpop.permute.xlu0 %431 }
  0xf5   : > { %v546_v32 = vsel %vm538_vm3, %v1682_v61, %v432_v25 }
  0xf6   : > { %v529_v30 = vpop.permute.xlu1 %528 }
  0xf7   : > { %v639_v8 = vsel %vm604_vm4, %v595_v29, %v529_v30 }
  0xf8   : > { %v480_v31 = vpop.permute.xlu0 %479  ;;  %904 = vmatmul.mubr.bf16.gmra.mrb[12].mxu1 %v639_v8 }
  0xf9   : > { %913 = vmatprep.mubr.bf16.mxu1 %v1421_v0  ;;  %v579_v34 = vsel %vm571_vm5, %v546_v32, %v480_v31 }
  0xfa   : > { %v450_v33 = vpop.permute.xlu1 %449 }
  0xfb   : > { %v564_v37 = vsel %vm538_vm3, %v1694_v14, %v450_v33 }
  0xfc   : > { %v513_v35 = vpop.permute.xlu0 %512 }
  0xfd   : > { %v615_v36 = vsel %vm604_vm4, %v579_v34, %v513_v35 }
  0xfe   : > { %824 = vmatmul.mubr.bf16.gmra.mrb[12].mxu0 %v615_v36  ;;  %v498_v50 = vpop.permute.xlu1 %497 }
  0xff   : > { %833 = vmatprep.mubr.bf16.mxu0 %v1421_v0  ;;  %v597_v40 = vsel %vm571_vm5, %v564_v37, %v498_v50 }
 0x100   : > { %v434_v38 = vpop.permute.xlu0 %433 }
 0x101   : > { %v548_v44 = vsel %vm538_vm3, %v1705_v26, %v434_v38 }
 0x102   : > { %v531_v41 = vpop.permute.xlu1 %530 }
 0x103   : > { %v642_v61 = vsel %vm604_vm4, %v597_v40, %v531_v41 }
 0x104   : > { %v482_v42 = vpop.permute.xlu0 %481  ;;  %914 = vmatmul.mubr.bf16.gmra.mrb[16].mxu1 %v642_v61 }
 0x105   : > { %923 = vmatprep.mubr.bf16.mxu1 %v1421_v0  ;;  %v581_v46 = vsel %vm571_vm5, %v548_v44, %v482_v42 }
 0x106   : > { %v452_v45 = vpop.permute.xlu1 %451 }
 0x107   : > { %v566_v51 = vsel %vm538_vm3, %v1718_v39, %v452_v45 }
 0x108   : > { %v515_v47 = vpop.permute.xlu0 %514 }
 0x109   : > { %v618_v49 = vsel %vm604_vm4, %v581_v46, %v515_v47 }
 0x10a   : > { %834 = vmatmul.mubr.bf16.gmra.mrb[16].mxu0 %v618_v49  ;;  %v500_v14 = vpop.permute.xlu1 %499 }
 0x10b   : > { %843 = vmatprep.mubr.bf16.mxu0 %v1421_v0  ;;  %v599_v52 = vsel %vm571_vm5, %v566_v51, %v500_v14 }
 0x10c   : > { %v436_v28 = vpop.permute.xlu0 %435 }
 0x10d   : > { %v550_v54 = vsel %vm538_vm3, %v1729_v48, %v436_v28 }
 0x10e   : > { %v533_v53 = vpop.permute.xlu1 %532 }
 0x10f   : > { %v645_v26 = vsel %vm604_vm4, %v599_v52, %v533_v53 }
 0x110   : > { %v484_v43 = vpop.permute.xlu0 %483  ;;  %924 = vmatmul.mubr.bf16.gmra.mrb[20].mxu1 %v645_v26 }
 0x111   : > { %933 = vmatprep.mubr.bf16.mxu1 %v1421_v0  ;;  %v583_v56 = vsel %vm571_vm5, %v550_v54, %v484_v43 }
 0x112   : > { %v454_v55 = vpop.permute.xlu1 %453 }
 0x113   : > { %v568_v13 = vsel %vm538_vm3, %v1742_v57, %v454_v55 }
 0x114   : > { %v517_v58 = vpop.permute.xlu0 %516 }
 0x115   : > { %v621_v59 = vsel %vm604_vm4, %v583_v56, %v517_v58 }
 0x116   : > { %844 = vmatmul.mubr.bf16.gmra.mrb[20].mxu0 %v621_v59  ;;  %v502_v39 = vpop.permute.xlu1 %501 }
 0x117   : > { %853 = vmatprep.mubr.bf16.mxu0 %v1421_v0  ;;  %v601_v60 = vsel %vm571_vm5, %v568_v13, %v502_v39 }
 0x118   : > { %v438_v17 = vpop.permute.xlu0 %437 }
 0x119   : > { %v552_v1 = vsel %vm538_vm3, %v1753_v3, %v438_v17 }
 0x11a   : > { %v535_v62 = vpop.permute.xlu1 %534 }
 0x11b   : > { %v648_v48 = vsel %vm604_vm4, %v601_v60, %v535_v62 }
 0x11c   : > { %v486_v63 = vpop.permute.xlu0 %485  ;;  %934 = vmatmul.mubr.bf16.gmra.mrb[24].mxu1 %v648_v48 }
 0x11d   : > { %943 = vmatprep.mubr.bf16.mxu1 %v1421_v0  ;;  %v585_v9 = vsel %vm571_vm5, %v552_v1, %v486_v63 }
 0x11e   : > { %v456_v2 = vpop.permute.xlu1 %455 }
 0x11f   : > { %v570_v7 = vsel %vm538_vm3, %v1766_v16, %v456_v2  ;;  %v672_v16 = vshrl.u32 %v671_v20, 7 }
 0x120   : > { %v519_v5 = vpop.permute.xlu0 %518 }
 0x121   : > { %v624_v6 = vsel %vm604_vm4, %v585_v9, %v519_v5  ;;  %v673_v21 = vsub.s32 0, %v672_v16  ;;  %v677_v23 = vsub.s32 1, %v672_v16 }
 0x122   : > { %854 = vmatmul.mubr.bf16.gmra.mrb[24].mxu0 %v624_v6  ;;  %v504_v57 = vpop.permute.xlu1 %503 }
 0x123   : > { %863 = vmatprep.mubr.bf16.mxu0 %v1421_v0  ;;  %v603_v4 = vsel %vm571_vm5, %v570_v7, %v504_v57  ;;  %v1894_v24 = vrot.slane %v669_v22, %v673_v21  ;;  %v1896_v25 = vrot.slane %v669_v22, %v677_v23 }
 0x124   : > { %v440_v10 = vpop.permute.xlu0 %439 }
 0x125   : > { %v554_v15 = vsel %vm538_vm3, %v1777_v27, %v440_v10 }
 0x126   : > { %v537_v11 = vpop.permute.xlu1 %536 }
 0x127   : > { %v651_v3 = vsel %vm604_vm4, %v603_v4, %v537_v11 }
 0x128   : > { %v488_v12 = vpop.permute.xlu0 %487  ;;  %944 = vmatmul.mubr.bf16.gmra.mrb[28].mxu1 %v651_v3 }
 0x129   : > { %v587_v18 = vsel %vm571_vm5, %v554_v15, %v488_v12 }
 0x12c   : > { %v521_v19 = vpop.permute.xlu0 %520 }
 0x12d   : > { %v627_v0 = vsel %vm604_vm4, %v587_v18, %v521_v19 }
 0x12e   : > { %864 = vmatmul.mubr.bf16.gmra.mrb[28].mxu0 %v627_v0 }
 0x1af   : > { %v875_v27 = vpop.f32.mrb[0].mxu1 }
 0x1b0   : > { %v876_v29 = vadd.f32 %v875_v27, %v1894_v24  ;;  %v877_v30 = vpop.f32.mrb[1].mxu1 }
 0x1b1   : > { %v878_v31 = vadd.f32 %v877_v30, %v1896_v25  ;;  %v795_v8 = vpop.f32.mrb[0].mxu0  ;;  %v879_v32 = vpop.f32.mrb[2].mxu1 }
 0x1b2   : > { %970 = vst [vmem:[%s1900_s26 + $0x100] sm:$0xff] %v876_v29  ;;  %v796_v33 = vadd.f32 %v795_v8, %v1894_v24  ;;  %v880_v34 = vadd.f32 %v879_v32, %v1894_v24  ;;  %v797_v35 = vpop.f32.mrb[1].mxu0  ;;  %v881_v36 = vpop.f32.mrb[3].mxu1 }
 0x1b3   : > { %1159 = vst [vmem:[%s1900_s26 + $0x110] sm:$0xff] %v878_v31  ;;  %v798_v50 = vadd.f32 %v797_v35, %v1896_v25  ;;  %v882_v37 = vadd.f32 %v881_v36, %v1896_v25  ;;  %v799_v38 = vpop.f32.mrb[2].mxu0 }
 0x1b4   : > { %954 = vst [vmem:[%s1900_s26] sm:$0xff] %v796_v33  ;;  %971 = vst [vmem:[%s1900_s26 + $0x108] sm:$0xff] %v880_v34  ;;  %v800_v40 = vadd.f32 %v799_v38, %v1894_v24  ;;  %v801_v41 = vpop.f32.mrb[3].mxu0 }
 0x1b5   : > { %1143 = vst [vmem:[%s1900_s26 + $0x10] sm:$0xff] %v798_v50  ;;  %1160 = vst [vmem:[%s1900_s26 + $0x118] sm:$0xff] %v882_v37  ;;  %v802_v42 = vadd.f32 %v801_v41, %v1896_v25 }
 0x1b6   : > { %955 = vst [vmem:[%s1900_s26 + $0x8] sm:$0xff] %v800_v40 }
 0x1b7   : > { %1144 = vst [vmem:[%s1900_s26 + $0x18] sm:$0xff] %v802_v42  ;;  %v885_v61 = vpop.f32.mrb[4].mxu1 }
 0x1b8   : > { %v886_v44 = vadd.f32 %v885_v61, %v1894_v24  ;;  %v887_v45 = vpop.f32.mrb[5].mxu1 }
 0x1b9   : > { %v888_v46 = vadd.f32 %v887_v45, %v1896_v25  ;;  %v805_v47 = vpop.f32.mrb[4].mxu0  ;;  %v889_v49 = vpop.f32.mrb[6].mxu1 }
 0x1ba   : > { %972 = vst [vmem:[%s1900_s26 + $0x120] sm:$0xff] %v886_v44  ;;  %v806_v14 = vadd.f32 %v805_v47, %v1894_v24  ;;  %v890_v51 = vadd.f32 %v889_v49, %v1894_v24  ;;  %v807_v28 = vpop.f32.mrb[5].mxu0  ;;  %v891_v52 = vpop.f32.mrb[7].mxu1 }
 0x1bb   : > { %1161 = vst [vmem:[%s1900_s26 + $0x130] sm:$0xff] %v888_v46  ;;  %v808_v53 = vadd.f32 %v807_v28, %v1896_v25  ;;  %v892_v43 = vadd.f32 %v891_v52, %v1896_v25  ;;  %v809_v26 = vpop.f32.mrb[6].mxu0 }
 0x1bc   : > { %956 = vst [vmem:[%s1900_s26 + $0x20] sm:$0xff] %v806_v14  ;;  %973 = vst [vmem:[%s1900_s26 + $0x128] sm:$0xff] %v890_v51  ;;  %v810_v54 = vadd.f32 %v809_v26, %v1894_v24  ;;  %v811_v55 = vpop.f32.mrb[7].mxu0 }
 0x1bd   : > { %1145 = vst [vmem:[%s1900_s26 + $0x30] sm:$0xff] %v808_v53  ;;  %1162 = vst [vmem:[%s1900_s26 + $0x138] sm:$0xff] %v892_v43  ;;  %v812_v56 = vadd.f32 %v811_v55, %v1896_v25 }
 0x1be   : > { %957 = vst [vmem:[%s1900_s26 + $0x28] sm:$0xff] %v810_v54 }
 0x1bf   : > { %1146 = vst [vmem:[%s1900_s26 + $0x38] sm:$0xff] %v812_v56  ;;  %v895_v58 = vpop.f32.mrb[8].mxu1 }
 0x1c0   : > { %v896_v59 = vadd.f32 %v895_v58, %v1894_v24  ;;  %v897_v39 = vpop.f32.mrb[9].mxu1 }
 0x1c1   : > { %v898_v13 = vadd.f32 %v897_v39, %v1896_v25  ;;  %v899_v17 = vpop.f32.mrb[10].mxu1 }
 0x1c2   : > { %974 = vst [vmem:[%s1900_s26 + $0x140] sm:$0xff] %v896_v59  ;;  %v900_v60 = vadd.f32 %v899_v17, %v1894_v24  ;;  %v901_v62 = vpop.f32.mrb[11].mxu1 }
 0x1c3   : > { %1163 = vst [vmem:[%s1900_s26 + $0x150] sm:$0xff] %v898_v13  ;;  %v902_v63 = vadd.f32 %v901_v62, %v1896_v25 }
 0x1c4   : > { %975 = vst [vmem:[%s1900_s26 + $0x148] sm:$0xff] %v900_v60 }
 0x1c5   : > { %v815_v48 = vpop.f32.mrb[8].mxu0  ;;  %1164 = vst [vmem:[%s1900_s26 + $0x158] sm:$0xff] %v902_v63 }
 0x1c6   : > { %v816_v1 = vadd.f32 %v815_v48, %v1894_v24  ;;  %v817_v2 = vpop.f32.mrb[9].mxu0 }
 0x1c7   : > { %v818_v9 = vadd.f32 %v817_v2, %v1896_v25  ;;  %v819_v5 = vpop.f32.mrb[10].mxu0 }
 0x1c8   : > { %958 = vst [vmem:[%s1900_s26 + $0x40] sm:$0xff] %v816_v1  ;;  %v820_v6 = vadd.f32 %v819_v5, %v1894_v24  ;;  %v821_v57 = vpop.f32.mrb[11].mxu0 }
 0x1c9   : > { %1147 = vst [vmem:[%s1900_s26 + $0x50] sm:$0xff] %v818_v9  ;;  %v822_v7 = vadd.f32 %v821_v57, %v1896_v25 }
 0x1ca   : > { %959 = vst [vmem:[%s1900_s26 + $0x48] sm:$0xff] %v820_v6 }
 0x1cb   : > { %1148 = vst [vmem:[%s1900_s26 + $0x58] sm:$0xff] %v822_v7  ;;  %v905_v10 = vpop.f32.mrb[12].mxu1 }
 0x1cc   : > { %v906_v4 = vadd.f32 %v905_v10, %v1894_v24  ;;  %v907_v11 = vpop.f32.mrb[13].mxu1 }
 0x1cd   : > { %v908_v12 = vadd.f32 %v907_v11, %v1896_v25  ;;  %v909_v3 = vpop.f32.mrb[14].mxu1 }
 0x1ce   : > { %976 = vst [vmem:[%s1900_s26 + $0x160] sm:$0xff] %v906_v4  ;;  %v910_v15 = vadd.f32 %v909_v3, %v1894_v24  ;;  %v911_v18 = vpop.f32.mrb[15].mxu1 }
 0x1cf   : > { %1165 = vst [vmem:[%s1900_s26 + $0x170] sm:$0xff] %v908_v12  ;;  %v912_v19 = vadd.f32 %v911_v18, %v1896_v25 }
 0x1d0   : > { %977 = vst [vmem:[%s1900_s26 + $0x168] sm:$0xff] %v910_v15 }
 0x1d1   : > { %v825_v0 = vpop.f32.mrb[12].mxu0  ;;  %1166 = vst [vmem:[%s1900_s26 + $0x178] sm:$0xff] %v912_v19 }
 0x1d2   : > { %v826_v20 = vadd.f32 %v825_v0, %v1894_v24  ;;  %v827_v16 = vpop.f32.mrb[13].mxu0 }
 0x1d3   : > { %v828_v21 = vadd.f32 %v827_v16, %v1896_v25  ;;  %v829_v22 = vpop.f32.mrb[14].mxu0 }
 0x1d4   : > { %960 = vst [vmem:[%s1900_s26 + $0x60] sm:$0xff] %v826_v20  ;;  %v830_v23 = vadd.f32 %v829_v22, %v1894_v24  ;;  %v831_v27 = vpop.f32.mrb[15].mxu0 }
 0x1d5   : > { %1149 = vst [vmem:[%s1900_s26 + $0x70] sm:$0xff] %v828_v21  ;;  %v832_v29 = vadd.f32 %v831_v27, %v1896_v25 }
 0x1d6   : > { %961 = vst [vmem:[%s1900_s26 + $0x68] sm:$0xff] %v830_v23 }
 0x1d7   : > { %1150 = vst [vmem:[%s1900_s26 + $0x78] sm:$0xff] %v832_v29  ;;  %v915_v30 = vpop.f32.mrb[16].mxu1 }
 0x1d8   : > { %v916_v31 = vadd.f32 %v915_v30, %v1894_v24  ;;  %v917_v8 = vpop.f32.mrb[17].mxu1 }
 0x1d9   : > { %v918_v32 = vadd.f32 %v917_v8, %v1896_v25  ;;  %v919_v33 = vpop.f32.mrb[18].mxu1 }
 0x1da   : > { %978 = vst [vmem:[%s1900_s26 + $0x180] sm:$0xff] %v916_v31  ;;  %v920_v34 = vadd.f32 %v919_v33, %v1894_v24  ;;  %v921_v35 = vpop.f32.mrb[19].mxu1 }
 0x1db   : > { %1167 = vst [vmem:[%s1900_s26 + $0x190] sm:$0xff] %v918_v32  ;;  %v922_v36 = vadd.f32 %v921_v35, %v1896_v25 }
 0x1dc   : > { %979 = vst [vmem:[%s1900_s26 + $0x188] sm:$0xff] %v920_v34 }
 0x1dd   : > { %v835_v50 = vpop.f32.mrb[16].mxu0  ;;  %1168 = vst [vmem:[%s1900_s26 + $0x198] sm:$0xff] %v922_v36 }
 0x1de   : > { %v836_v37 = vadd.f32 %v835_v50, %v1894_v24  ;;  %v837_v38 = vpop.f32.mrb[17].mxu0 }
 0x1df   : > { %v838_v40 = vadd.f32 %v837_v38, %v1896_v25  ;;  %v839_v41 = vpop.f32.mrb[18].mxu0 }
 0x1e0   : > { %962 = vst [vmem:[%s1900_s26 + $0x80] sm:$0xff] %v836_v37  ;;  %v840_v42 = vadd.f32 %v839_v41, %v1894_v24  ;;  %v841_v61 = vpop.f32.mrb[19].mxu0 }
 0x1e1   : > { %1151 = vst [vmem:[%s1900_s26 + $0x90] sm:$0xff] %v838_v40  ;;  %v842_v44 = vadd.f32 %v841_v61, %v1896_v25 }
 0x1e2   : > { %963 = vst [vmem:[%s1900_s26 + $0x88] sm:$0xff] %v840_v42 }
 0x1e3   : > { %1152 = vst [vmem:[%s1900_s26 + $0x98] sm:$0xff] %v842_v44  ;;  %v925_v45 = vpop.f32.mrb[20].mxu1 }
 0x1e4   : > { %v926_v46 = vadd.f32 %v925_v45, %v1894_v24  ;;  %v927_v47 = vpop.f32.mrb[21].mxu1 }
 0x1e5   : > { %v928_v49 = vadd.f32 %v927_v47, %v1896_v25  ;;  %v929_v14 = vpop.f32.mrb[22].mxu1 }
 0x1e6   : > { %980 = vst [vmem:[%s1900_s26 + $0x1a0] sm:$0xff] %v926_v46  ;;  %v930_v51 = vadd.f32 %v929_v14, %v1894_v24  ;;  %v931_v28 = vpop.f32.mrb[23].mxu1 }
 0x1e7   : > { %1169 = vst [vmem:[%s1900_s26 + $0x1b0] sm:$0xff] %v928_v49  ;;  %v932_v52 = vadd.f32 %v931_v28, %v1896_v25 }
 0x1e8   : > { %981 = vst [vmem:[%s1900_s26 + $0x1a8] sm:$0xff] %v930_v51 }
 0x1e9   : > { %v845_v53 = vpop.f32.mrb[20].mxu0  ;;  %1170 = vst [vmem:[%s1900_s26 + $0x1b8] sm:$0xff] %v932_v52 }
 0x1ea   : > { %v846_v43 = vadd.f32 %v845_v53, %v1894_v24  ;;  %v847_v26 = vpop.f32.mrb[21].mxu0 }
 0x1eb   : > { %v848_v54 = vadd.f32 %v847_v26, %v1896_v25  ;;  %v849_v55 = vpop.f32.mrb[22].mxu0 }
 0x1ec   : > { %964 = vst [vmem:[%s1900_s26 + $0xa0] sm:$0xff] %v846_v43  ;;  %v850_v56 = vadd.f32 %v849_v55, %v1894_v24  ;;  %v851_v58 = vpop.f32.mrb[23].mxu0 }
 0x1ed   : > { %1153 = vst [vmem:[%s1900_s26 + $0xb0] sm:$0xff] %v848_v54  ;;  %v852_v59 = vadd.f32 %v851_v58, %v1896_v25 }
 0x1ee   : > { %965 = vst [vmem:[%s1900_s26 + $0xa8] sm:$0xff] %v850_v56 }
 0x1ef   : > { %1154 = vst [vmem:[%s1900_s26 + $0xb8] sm:$0xff] %v852_v59  ;;  %v935_v39 = vpop.f32.mrb[24].mxu1 }
 0x1f0   : > { %v936_v13 = vadd.f32 %v935_v39, %v1894_v24  ;;  %v937_v17 = vpop.f32.mrb[25].mxu1 }
 0x1f1   : > { %v938_v60 = vadd.f32 %v937_v17, %v1896_v25  ;;  %v939_v62 = vpop.f32.mrb[26].mxu1 }
 0x1f2   : > { %982 = vst [vmem:[%s1900_s26 + $0x1c0] sm:$0xff] %v936_v13  ;;  %v940_v63 = vadd.f32 %v939_v62, %v1894_v24  ;;  %v941_v48 = vpop.f32.mrb[27].mxu1 }
 0x1f3   : > { %1171 = vst [vmem:[%s1900_s26 + $0x1d0] sm:$0xff] %v938_v60  ;;  %v942_v1 = vadd.f32 %v941_v48, %v1896_v25 }
 0x1f4   : > { %983 = vst [vmem:[%s1900_s26 + $0x1c8] sm:$0xff] %v940_v63 }
 0x1f5   : > { %v855_v2 = vpop.f32.mrb[24].mxu0  ;;  %1172 = vst [vmem:[%s1900_s26 + $0x1d8] sm:$0xff] %v942_v1 }
 0x1f6   : > { %v856_v9 = vadd.f32 %v855_v2, %v1894_v24  ;;  %v857_v5 = vpop.f32.mrb[25].mxu0 }
 0x1f7   : > { %v858_v6 = vadd.f32 %v857_v5, %v1896_v25  ;;  %v859_v57 = vpop.f32.mrb[26].mxu0 }
 0x1f8   : > { %966 = vst [vmem:[%s1900_s26 + $0xc0] sm:$0xff] %v856_v9  ;;  %v860_v7 = vadd.f32 %v859_v57, %v1894_v24  ;;  %v861_v10 = vpop.f32.mrb[27].mxu0 }
 0x1f9   : > { %1155 = vst [vmem:[%s1900_s26 + $0xd0] sm:$0xff] %v858_v6  ;;  %v862_v4 = vadd.f32 %v861_v10, %v1896_v25 }
 0x1fa   : > { %967 = vst [vmem:[%s1900_s26 + $0xc8] sm:$0xff] %v860_v7 }
 0x1fb   : > { %1156 = vst [vmem:[%s1900_s26 + $0xd8] sm:$0xff] %v862_v4  ;;  %v945_v11 = vpop.f32.mrb[28].mxu1 }
 0x1fc   : > { %v946_v12 = vadd.f32 %v945_v11, %v1894_v24  ;;  %v947_v3 = vpop.f32.mrb[29].mxu1 }
 0x1fd   : > { %v948_v15 = vadd.f32 %v947_v3, %v1896_v25  ;;  %v949_v18 = vpop.f32.mrb[30].mxu1 }
 0x1fe   : > { %984 = vst [vmem:[%s1900_s26 + $0x1e0] sm:$0xff] %v946_v12  ;;  %v950_v19 = vadd.f32 %v949_v18, %v1894_v24  ;;  %v951_v0 = vpop.f32.mrb[31].mxu1 }
 0x1ff   : > { %1173 = vst [vmem:[%s1900_s26 + $0x1f0] sm:$0xff] %v948_v15  ;;  %v952_v20 = vadd.f32 %v951_v0, %v1896_v25 }
 0x200   : > { %985 = vst [vmem:[%s1900_s26 + $0x1e8] sm:$0xff] %v950_v19 }
 0x201   : > { %v865_v16 = vpop.f32.mrb[28].mxu0  ;;  %1174 = vst [vmem:[%s1900_s26 + $0x1f8] sm:$0xff] %v952_v20 }
 0x202   : > { %v866_v21 = vadd.f32 %v865_v16, %v1894_v24  ;;  %v867_v22 = vpop.f32.mrb[29].mxu0 }
 0x203   : > { %v868_v23 = vadd.f32 %v867_v22, %v1896_v25  ;;  %v869_v27 = vpop.f32.mrb[30].mxu0 }
 0x204   : > { %968 = vst [vmem:[%s1900_s26 + $0xe0] sm:$0xff] %v866_v21  ;;  %v870_v29 = vadd.f32 %v869_v27, %v1894_v24  ;;  %v871_v30 = vpop.f32.mrb[31].mxu0 }
 0x205   : > { %1157 = vst [vmem:[%s1900_s26 + $0xf0] sm:$0xff] %v868_v23  ;;  %v872_v31 = vadd.f32 %v871_v30, %v1896_v25 }
 0x206   : > { %969 = vst [vmem:[%s1900_s26 + $0xe8] sm:$0xff] %v870_v29 }
 0x207   : > { %1158 = vst [vmem:[%s1900_s26 + $0xf8] sm:$0xff] %v872_v31 }
 0x208   : > { %1358 = shalt.err (!%p1355_p7)
}
 0x209   : > { %s1359_s11 = scalar_lea.hbm %s2029_s29, 8192  ;;  %s1363_s8 = scalar_lea.hbm %s2082_s3, 16384 }
 0x20a   : > { %p1360_p9 = scmp.ne.s32.totalorder %s2029_s29, %s1359_s11  ;;  %p1364_p5 = scmp.lt.u32.totalorder %s2029_s29, %s2082_s3 }
 0x20b   : > { %p1365_p11 = scmp.lt.u32.totalorder %s1363_s8, %s1359_s11  ;;  %p1367_p4 = scmp.lt.u32.totalorder %s1359_s11, %s2029_s29 }
 0x20c   : > { %p1361_p1 = pnand %p1360_p9, %p1542_p12 }
 0x20d   : > { %p1366_p2 = por %p1365_p11, %p1364_p5 }
 0x20e   : > { %p1362_p0 = pneg %p1361_p1 }
 0x20f   : > { %p1368_p6 = por %p1367_p4, %p1366_p2 }
 0x211   : > { %p1369_p8 = pnand %p1368_p6, %p1362_p0 }
 0x213   : > { %1372 = shalt.err (!%p1369_p8)
}
 0x214   : > { %s1426_s25 = smov 128   ;;  %s1427_s26 = smov 8  }
 0x215   : > { %1204 = dma.vmem_to_hbm [thread:$0]  (%p1542_p12), %s2031_s27, 8192, %s2029_s29, %s1020_s16, %s1426_s25, %s1426_s25, %s1427_s26  }
 0x216 PF: > { %s1048_s5 = sand.u32 1, %s1403_s12   ;;  %p2099_p10 = scmp.ne.s32.totalorder %s2087_s19, 0 }
 0x217   : > { %p2100_p13 = scmp.ge.s32.totalorder %s1415_s15, 2  ;;  %s1049_s28 = scalar_lea.sflag [#allocation4], %s1048_s5 }
 0x219   : > { %p1215_p3 = pnand %p2100_p13, %p2099_p10 }
 0x21b   : > { %1398 = dma.done.wait (!%p1215_p3), %s1049_s28, 8192  }
 0x21c   : > { %1400 = vsyncadd (!%p1215_p3), %s1049_s28, 4294959104  ;;  %p17_p7 = scmp.ge.s32.totalorder %s1504_s24, 4   ;;  %s2101_s12 = smov %s1407_s13 }
 0x21d   : > { %s2102_s13 = smov %s1411_s14  ;;  %s2103_s14 = smov %s1538_s17 }
 0x21e   : > { %s2104_s15 = smov %s1504_s24  ;;  %19 = sbr.rel (!%p17_p7) target bundleno = 6 (0x6), region = 82 }
 0x225   :  { %1054 = vsyncpa [#allocation3], 1 }
 0x226   :  { %1056 = vsyncpa [#allocation3 + $0x1], 1 }
 0x227   :  { %1057 = vsyncpa [#allocation6], 1 }
 0x228   :  { %1058 = vsyncpa [#allocation4], 1 }
 0x229   :  { %1060 = vsyncpa [#allocation4 + $0x1], 1 }

</bundles_post_ra>
